<compile_context>
chip_gen: v5e
topology: v5e:2x2
jax: 0.10.0
libtpu: 0.0.40
codegen_flags: <defaults>
</compile_context>

<pallas_src>
import functools

import jax
import jax.numpy as jnp
from jax.experimental import pallas as pl
from jax.experimental.pallas import tpu as pltpu

LANE = 128      # vreg lane width
SUBLANE = 8     # vreg sublane count (f32)


def _round_up(x, m):
    return ((x + m - 1) // m) * m


def _pad_to(a, shape):
    return jnp.pad(a, [(0, s - d) for d, s in zip(a.shape, shape)])


def _qnet_kernel(x_ref, w1_ref, b1_ref, w2_ref, b2_ref,
                 w3_ref, b3_ref, w4_ref, b4_ref, out_ref):
    # Whole forward pass for one batch tile, fully resident in VMEM.
    # MXU matmuls accumulate in f32; bias add + ReLU stay f32 on the VPU
    # (safe on v5e, which has no bf16 VPU path -- only its MXU is bf16).
    cdt = w1_ref.dtype                      # MXU operand dtype (bf16 or f32)
    x = x_ref[...]                          # f32 (mirrors x.float())

    h = jnp.dot(x.astype(cdt), w1_ref[...],
                preferred_element_type=jnp.float32) + b1_ref[...]
    h = jnp.maximum(h, 0.0)

    h = jnp.dot(h.astype(cdt), w2_ref[...],
                preferred_element_type=jnp.float32) + b2_ref[...]
    h = jnp.maximum(h, 0.0)

    h = jnp.dot(h.astype(cdt), w3_ref[...],
                preferred_element_type=jnp.float32) + b3_ref[...]
    h = jnp.maximum(h, 0.0)

    # Last matmul uses the lane-padded (hid_p, 128) weight for a full MXU push,
    # but only the true out_dim lanes are biased and stored (unpadded HBM
    # writeback; accepts a masked vst instead of a 32x-inflated store).
    h = jnp.dot(h.astype(cdt), w4_ref[...],
                preferred_element_type=jnp.float32)
    out_dim = out_ref.shape[-1]
    out_ref[...] = (h[:, :out_dim] + b4_ref[...]).astype(out_ref.dtype)


def prepare_params(params, compute_dtype=jnp.bfloat16):
    """One-time parameter prep (call once per weight update, NOT per forward).

    Transposes PyTorch-layout (out, in) weights to (in, out), zero-pads the
    hidden dims to lane-dense multiples of 128, and casts MXU operands to
    `compute_dtype`.  Biases stay f32 (VPU epilogue).  b4 stays unpadded so
    its width carries the true output dim to the forward wrapper.
    """
    w1, w2, w3, w4 = (params[f"w{i}"].T for i in range(1, 5))
    b1, b2, b3, b4 = (params[f"b{i}"].reshape(1, -1) for i in range(1, 5))
    in_dim, hid = w1.shape
    out_dim = w4.shape[1]
    hid_p = _round_up(hid, LANE)
    out_p = _round_up(out_dim, LANE)
    return {
        "w1": _pad_to(w1, (in_dim, hid_p)).astype(compute_dtype),
        "b1": _pad_to(b1, (1, hid_p)).astype(jnp.float32),
        "w2": _pad_to(w2, (hid_p, hid_p)).astype(compute_dtype),
        "b2": _pad_to(b2, (1, hid_p)).astype(jnp.float32),
        "w3": _pad_to(w3, (hid_p, hid_p)).astype(compute_dtype),
        "b3": _pad_to(b3, (1, hid_p)).astype(jnp.float32),
        "w4": _pad_to(w4, (hid_p, out_p)).astype(compute_dtype),
        "b4": b4.astype(jnp.float32),           # unpadded: defines out_dim
    }


@functools.partial(jax.jit, static_argnames=("block_batch",))
def qnetwork_forward(x, prepared, *, block_batch=2048):
    """Fused QNetwork forward. `prepared` must come from prepare_params()."""
    batch, in_dim = x.shape
    hid_p = prepared["w1"].shape[1]
    out_p = prepared["w4"].shape[1]
    out_dim = prepared["b4"].shape[1]

    x = x.astype(jnp.float32)                   # mirrors x.float(); no-op if f32

    # Batch tile: as large as allowed (amortizes per-grid-step overhead),
    # multiple of 8 sublanes.  If that leaves an odd number of grid steps and
    # the batch is splittable, re-split so the grid length is even -- lets
    # dimension_semantics=("parallel",) actually use both v7x TensorCores.
    tb = _round_up(min(block_batch, max(batch, SUBLANE)), SUBLANE)
    n_blocks = pl.cdiv(batch, tb)
    if n_blocks % 2 == 1 and batch > SUBLANE:
        tb = _round_up(pl.cdiv(batch, n_blocks + 1), SUBLANE)
        n_blocks = pl.cdiv(batch, tb)
    grid = (n_blocks,)                           # ragged last block handled by Pallas

    # Advisory cost for XLA's scheduler.
    w_bytes = jnp.dtype(prepared["w1"].dtype).itemsize
    flops = 2 * batch * (in_dim * hid_p + 2 * hid_p * hid_p + hid_p * out_p)
    bytes_accessed = (
        batch * in_dim * 4 + batch * out_dim * 4
        + (prepared["w1"].size + prepared["w2"].size
           + prepared["w3"].size + prepared["w4"].size) * w_bytes
        + (prepared["b1"].size + prepared["b2"].size
           + prepared["b3"].size + prepared["b4"].size) * 4)
    cost = pl.CostEstimate(flops=flops, transcendentals=0,
                           bytes_accessed=bytes_accessed)

    resident = lambda i: (0, 0)   # weights/biases: same block every grid step

    out = pl.pallas_call(
        _qnet_kernel,
        out_shape=jax.ShapeDtypeStruct((batch, out_dim), jnp.float32),
        grid=grid,
        in_specs=[
            pl.BlockSpec((tb, in_dim), lambda i: (i, 0)),      # x batch tile
            pl.BlockSpec(prepared["w1"].shape, resident),      # w1
            pl.BlockSpec(prepared["b1"].shape, resident),      # b1
            pl.BlockSpec(prepared["w2"].shape, resident),      # w2
            pl.BlockSpec(prepared["b2"].shape, resident),      # b2
            pl.BlockSpec(prepared["w3"].shape, resident),      # w3
            pl.BlockSpec(prepared["b3"].shape, resident),      # b3
            pl.BlockSpec(prepared["w4"].shape, resident),      # w4 (lane-padded)
            pl.BlockSpec(prepared["b4"].shape, resident),      # b4 (unpadded)
        ],
        out_specs=pl.BlockSpec((tb, out_dim), lambda i: (i, 0)),
        compiler_params=pltpu.CompilerParams(
            dimension_semantics=("parallel",),
            vmem_limit_bytes=32 * 1024 * 1024),
        cost_estimate=cost,
    )(x, prepared["w1"], prepared["b1"], prepared["w2"], prepared["b2"],
      prepared["w3"], prepared["b3"], prepared["w4"], prepared["b4"])
    return out


def init_qnetwork_params(key, input_dim, hidden_dim, output_dim):
    """PyTorch nn.Linear-style params: w (out,in), b (out,), U(+-1/sqrt(fan_in))."""
    dims = [(input_dim, hidden_dim), (hidden_dim, hidden_dim),
            (hidden_dim, hidden_dim), (hidden_dim, output_dim)]
    params = {}
    for i, (fan_in, fan_out) in enumerate(dims, start=1):
        key, kw, kb = jax.random.split(key, 3)
        bound = 1.0 / jnp.sqrt(jnp.float32(fan_in))
        params[f"w{i}"] = jax.random.uniform(
            kw, (fan_out, fan_in), jnp.float32, -bound, bound)
        params[f"b{i}"] = jax.random.uniform(
            kb, (fan_out,), jnp.float32, -bound, bound)
    return params


def qnetwork_reference(x, params):
    """Plain-JAX reference (matches the PyTorch module exactly)."""
    h = x.astype(jnp.float32)
    h = jnp.maximum(h @ params["w1"].T + params["b1"], 0.0)
    h = jnp.maximum(h @ params["w2"].T + params["b2"], 0.0)
    h = jnp.maximum(h @ params["w3"].T + params["b3"], 0.0)
    return h @ params["w4"].T + params["b4"]


if __name__ == "__main__":
    input_dim, hidden_dim, output_dim = 16, 32, 4
    batch = 20   # not a tile multiple -> exercises even-grid split + ragged last block

    key = jax.random.PRNGKey(0)
    key, kx = jax.random.split(key)
    x = jax.random.normal(kx, (batch, input_dim), jnp.float32)
    params = init_qnetwork_params(key, input_dim, hidden_dim, output_dim)

    ref = qnetwork_reference(x, params)

    # Default fast path: bf16 MXU operands, f32 accumulation (all generations).
    prep_bf16 = prepare_params(params)                      # one-time prep
    out = jax.block_until_ready(qnetwork_forward(x, prep_bf16))
    assert out.shape == (batch, output_dim)
    assert jnp.allclose(out, ref, atol=5e-2, rtol=5e-2)

    # f32 MXU path (tight check against the reference).
    prep_f32 = prepare_params(params, compute_dtype=jnp.float32)
    out_f32 = jax.block_until_ready(qnetwork_forward(x, prep_f32))
    assert out_f32.shape == (batch, output_dim)
    assert jnp.allclose(out_f32, ref, atol=1e-5, rtol=1e-5)

    print("KERNEL_OK")
</pallas_src>

<mosaic_0001>
module attributes {stable_mosaic.version = 11 : i64} {
  func.func @_qnet_kernel(%arg0: i32, %arg1: memref<16x16xf32, #tpu.memory_space<vmem>>, %arg2: memref<16x128xbf16, #tpu.memory_space<vmem>>, %arg3: memref<1x128xf32, #tpu.memory_space<vmem>>, %arg4: memref<128x128xbf16, #tpu.memory_space<vmem>>, %arg5: memref<1x128xf32, #tpu.memory_space<vmem>>, %arg6: memref<128x128xbf16, #tpu.memory_space<vmem>>, %arg7: memref<1x128xf32, #tpu.memory_space<vmem>>, %arg8: memref<128x128xbf16, #tpu.memory_space<vmem>>, %arg9: memref<1x4xf32, #tpu.memory_space<vmem>>, %arg10: memref<16x4xf32, #tpu.memory_space<vmem>>) attributes {dimension_semantics = [#tpu.dimension_semantics<parallel>], iteration_bounds = array<i64: 2>, scalar_prefetch = 0 : i64, scratch_operands = 0 : i64, tpu.core_type = #tpu.core_type<tc>, window_params = [{transform_indices = @transform_0, window_bounds = array<i64: 16, 16>}, {pipeline_mode = #tpu.pipeline_mode<synchronous>, transform_indices = @transform_1, window_bounds = array<i64: 16, 128>}, {pipeline_mode = #tpu.pipeline_mode<synchronous>, transform_indices = @transform_2, window_bounds = array<i64: 1, 128>}, {pipeline_mode = #tpu.pipeline_mode<synchronous>, transform_indices = @transform_3, window_bounds = array<i64: 128, 128>}, {pipeline_mode = #tpu.pipeline_mode<synchronous>, transform_indices = @transform_4, window_bounds = array<i64: 1, 128>}, {pipeline_mode = #tpu.pipeline_mode<synchronous>, transform_indices = @transform_5, window_bounds = array<i64: 128, 128>}, {pipeline_mode = #tpu.pipeline_mode<synchronous>, transform_indices = @transform_6, window_bounds = array<i64: 1, 128>}, {pipeline_mode = #tpu.pipeline_mode<synchronous>, transform_indices = @transform_7, window_bounds = array<i64: 128, 128>}, {pipeline_mode = #tpu.pipeline_mode<synchronous>, transform_indices = @transform_8, window_bounds = array<i64: 1, 4>}, {transform_indices = @transform_9, window_bounds = array<i64: 16, 4>}]} {
    %c0 = arith.constant 0 : index
    %c0_0 = arith.constant 0 : index
    %0 = vector.load %arg1[%c0, %c0_0] : memref<16x16xf32, #tpu.memory_space<vmem>>, vector<16x16xf32>
    %1 = arith.truncf %0 : vector<16x16xf32> to vector<16x16xbf16>
    %c0_1 = arith.constant 0 : index
    %c0_2 = arith.constant 0 : index
    %2 = vector.load %arg2[%c0_1, %c0_2] : memref<16x128xbf16, #tpu.memory_space<vmem>>, vector<16x128xbf16>
    %cst = arith.constant dense<0.000000e+00> : vector<16x128xf32>
    %3 = tpu.matmul %1, %2, %cst {dimension_numbers = #tpu.dot_dimension_numbers<[1], [0], [0], [1], [0, 0, 1, 1], [], []>} : vector<16x16xbf16>, vector<16x128xbf16>, vector<16x128xf32> -> vector<16x128xf32>
    %c0_3 = arith.constant 0 : index
    %c0_4 = arith.constant 0 : index
    %4 = vector.load %arg3[%c0_3, %c0_4] : memref<1x128xf32, #tpu.memory_space<vmem>>, vector<1x128xf32>
    %5 = vector.broadcast %4 : vector<1x128xf32> to vector<16x128xf32>
    %6 = arith.addf %3, %5 : vector<16x128xf32>
    %cst_5 = arith.constant 0.000000e+00 : f32
    %7 = vector.broadcast %cst_5 : f32 to vector<16x128xf32>
    %8 = arith.maximumf %6, %7 : vector<16x128xf32>
    %9 = arith.truncf %8 : vector<16x128xf32> to vector<16x128xbf16>
    %c0_6 = arith.constant 0 : index
    %c0_7 = arith.constant 0 : index
    %10 = vector.load %arg4[%c0_6, %c0_7] : memref<128x128xbf16, #tpu.memory_space<vmem>>, vector<128x128xbf16>
    %cst_8 = arith.constant dense<0.000000e+00> : vector<16x128xf32>
    %11 = tpu.matmul %9, %10, %cst_8 {dimension_numbers = #tpu.dot_dimension_numbers<[1], [0], [0], [1], [0, 0, 1, 1], [], []>} : vector<16x128xbf16>, vector<128x128xbf16>, vector<16x128xf32> -> vector<16x128xf32>
    %c0_9 = arith.constant 0 : index
    %c0_10 = arith.constant 0 : index
    %12 = vector.load %arg5[%c0_9, %c0_10] : memref<1x128xf32, #tpu.memory_space<vmem>>, vector<1x128xf32>
    %13 = vector.broadcast %12 : vector<1x128xf32> to vector<16x128xf32>
    %14 = arith.addf %11, %13 : vector<16x128xf32>
    %cst_11 = arith.constant 0.000000e+00 : f32
    %15 = vector.broadcast %cst_11 : f32 to vector<16x128xf32>
    %16 = arith.maximumf %14, %15 : vector<16x128xf32>
    %17 = arith.truncf %16 : vector<16x128xf32> to vector<16x128xbf16>
    %c0_12 = arith.constant 0 : index
    %c0_13 = arith.constant 0 : index
    %18 = vector.load %arg6[%c0_12, %c0_13] : memref<128x128xbf16, #tpu.memory_space<vmem>>, vector<128x128xbf16>
    %cst_14 = arith.constant dense<0.000000e+00> : vector<16x128xf32>
    %19 = tpu.matmul %17, %18, %cst_14 {dimension_numbers = #tpu.dot_dimension_numbers<[1], [0], [0], [1], [0, 0, 1, 1], [], []>} : vector<16x128xbf16>, vector<128x128xbf16>, vector<16x128xf32> -> vector<16x128xf32>
    %c0_15 = arith.constant 0 : index
    %c0_16 = arith.constant 0 : index
    %20 = vector.load %arg7[%c0_15, %c0_16] : memref<1x128xf32, #tpu.memory_space<vmem>>, vector<1x128xf32>
    %21 = vector.broadcast %20 : vector<1x128xf32> to vector<16x128xf32>
    %22 = arith.addf %19, %21 : vector<16x128xf32>
    %cst_17 = arith.constant 0.000000e+00 : f32
    %23 = vector.broadcast %cst_17 : f32 to vector<16x128xf32>
    %24 = arith.maximumf %22, %23 : vector<16x128xf32>
    %25 = arith.truncf %24 : vector<16x128xf32> to vector<16x128xbf16>
    %c0_18 = arith.constant 0 : index
    %c0_19 = arith.constant 0 : index
    %26 = vector.load %arg8[%c0_18, %c0_19] : memref<128x128xbf16, #tpu.memory_space<vmem>>, vector<128x128xbf16>
    %cst_20 = arith.constant dense<0.000000e+00> : vector<16x128xf32>
    %27 = tpu.matmul %25, %26, %cst_20 {dimension_numbers = #tpu.dot_dimension_numbers<[1], [0], [0], [1], [0, 0, 1, 1], [], []>} : vector<16x128xbf16>, vector<128x128xbf16>, vector<16x128xf32> -> vector<16x128xf32>
    %28 = vector.extract_strided_slice %27 {offsets = [0, 0], sizes = [16, 4], strides = [1, 1]} : vector<16x128xf32> to vector<16x4xf32>
    %c0_21 = arith.constant 0 : index
    %c0_22 = arith.constant 0 : index
    %29 = vector.load %arg9[%c0_21, %c0_22] : memref<1x4xf32, #tpu.memory_space<vmem>>, vector<1x4xf32>
    %30 = vector.broadcast %29 : vector<1x4xf32> to vector<16x4xf32>
    %31 = arith.addf %28, %30 : vector<16x4xf32>
    %c0_23 = arith.constant 0 : index
    %c0_24 = arith.constant 0 : index
    %32 = vector.load %arg10[%c0_23, %c0_24] : memref<16x4xf32, #tpu.memory_space<vmem>>, vector<16x4xf32>
    tpu.vector_store %arg10[%c0_23, %c0_24], %31 {strides = array<i32>} : memref<16x4xf32, #tpu.memory_space<vmem>>, vector<16x4xf32>,
    return
  }
  func.func @transform_0(%arg0: i32) -> (i32, i32) {
    %c0_i32 = arith.constant 0 : i32
    %c0_i32_0 = arith.constant 0 : i32
    return %arg0, %c0_i32 : i32, i32
  }
  func.func @transform_1(%arg0: i32) -> (i32, i32) {
    %c0_i32 = arith.constant 0 : i32
    %c0_i32_0 = arith.constant 0 : i32
    %c0_i32_1 = arith.constant 0 : i32
    return %c0_i32, %c0_i32_0 : i32, i32
  }
  func.func @transform_2(%arg0: i32) -> (i32, i32) {
    %c0_i32 = arith.constant 0 : i32
    %c0_i32_0 = arith.constant 0 : i32
    %c0_i32_1 = arith.constant 0 : i32
    return %c0_i32, %c0_i32_0 : i32, i32
  }
  func.func @transform_3(%arg0: i32) -> (i32, i32) {
    %c0_i32 = arith.constant 0 : i32
    %c0_i32_0 = arith.constant 0 : i32
    %c0_i32_1 = arith.constant 0 : i32
    return %c0_i32, %c0_i32_0 : i32, i32
  }
  func.func @transform_4(%arg0: i32) -> (i32, i32) {
    %c0_i32 = arith.constant 0 : i32
    %c0_i32_0 = arith.constant 0 : i32
    %c0_i32_1 = arith.constant 0 : i32
    return %c0_i32, %c0_i32_0 : i32, i32
  }
  func.func @transform_5(%arg0: i32) -> (i32, i32) {
    %c0_i32 = arith.constant 0 : i32
    %c0_i32_0 = arith.constant 0 : i32
    %c0_i32_1 = arith.constant 0 : i32
    return %c0_i32, %c0_i32_0 : i32, i32
  }
  func.func @transform_6(%arg0: i32) -> (i32, i32) {
    %c0_i32 = arith.constant 0 : i32
    %c0_i32_0 = arith.constant 0 : i32
    %c0_i32_1 = arith.constant 0 : i32
    return %c0_i32, %c0_i32_0 : i32, i32
  }
  func.func @transform_7(%arg0: i32) -> (i32, i32) {
    %c0_i32 = arith.constant 0 : i32
    %c0_i32_0 = arith.constant 0 : i32
    %c0_i32_1 = arith.constant 0 : i32
    return %c0_i32, %c0_i32_0 : i32, i32
  }
  func.func @transform_8(%arg0: i32) -> (i32, i32) {
    %c0_i32 = arith.constant 0 : i32
    %c0_i32_0 = arith.constant 0 : i32
    %c0_i32_1 = arith.constant 0 : i32
    return %c0_i32, %c0_i32_0 : i32, i32
  }
  func.func @transform_9(%arg0: i32) -> (i32, i32) {
    %c0_i32 = arith.constant 0 : i32
    %c0_i32_0 = arith.constant 0 : i32
    return %arg0, %c0_i32 : i32, i32
  }
}

</mosaic_0001>

<bundles_post_ra>
// kernel: qnetwork_forward.1
= control target key start
LH: loop header
LB: loop body
LE: loop exit
PB: predicated region body
PF: predicated region fallthrough
CT: control target
= control target key end

     0   :  { %14 = vsyncpa [#allocation3], 0  ;;  %s1610_s0 = inlined_call_operand.vmem [shape: f32[20,16], index: 0, kind: input, shape index: {}]   ;;  %s1611_s1 = inlined_call_operand.vmem [shape: bf16[16,128], index: 1, kind: input, shape index: {}]   ;;  %s1612_s2 = inlined_call_operand.vmem [shape: f32[1,128], index: 2, kind: input, shape index: {}]   ;;  %s1613_s3 = inlined_call_operand.hbm [shape: bf16[128,128], index: 3, kind: input, shape index: {}]   ;;  %s1614_s4 = inlined_call_operand.vmem [shape: f32[1,128], index: 4, kind: input, shape index: {}]   ;;  %s1615_s5 = inlined_call_operand.hbm [shape: bf16[128,128], index: 5, kind: input, shape index: {}]   ;;  %s1616_s6 = inlined_call_operand.vmem [shape: f32[1,128], index: 6, kind: input, shape index: {}]   ;;  %s1617_s7 = inlined_call_operand.hbm [shape: bf16[128,128], index: 7, kind: input, shape index: {}]   ;;  %s1618_s8 = inlined_call_operand.vmem [shape: f32[1,4], index: 8, kind: input, shape index: {}]   ;;  %s1619_s9 = inlined_call_operand.vmem [shape: f32[20,4], index: 9, kind: output, shape index: {}]  }
   0x1   :  { %15 = vsyncpa [#allocation5], 0  ;;  %s1474_s30 = smov 0   ;;  %s1476_s10 = smov 0  }
   0x2   :  { %s1478_s11 = smov 0  }
   0x3 LB: > { %s1487_s12 = sadd.s32 4294967295, %s1385_s11   ;;  %s1489_s13 = sadd.s32 1, %s1385_s11   ;;  %s1385_s11 = sphi %s1478_s11, %s1625_s11   ;;  %s1381_s10 = sphi %s1476_s10, %s1624_s10   ;;  %s1377_s30 = sphi %s1474_s30, %s1623_s30  }
   0x4   : > { %s219_s14 = ssub.s32 %s1385_s11, %s1489_s13  ;;  %s222_s15 = sadd.s32 1, %s1381_s10 }
   0x5   : > { %p220_p0 = scmp.eq.s32.totalorder %s219_s14, 0  ;;  %p232_p1 = scmp.ne.s32.totalorder %s1381_s10, %s1377_s30 }
   0x6   : > { %p233_p2 = scmp.eq.s32.totalorder %s1487_s12, 1  ;;  %p950_p3 = scmp.ge.s32.totalorder %s1385_s11, 1 }
   0x7   : > { %s1497_s16 = scalar_select %p220_p0, %s1381_s10, %s222_s15  }
   0x8   : > { %p1499_p4 = por %p233_p2, %p232_p1  ;;  %p246_p5 = scmp.lt.s32.totalorder %s1385_s11, 3 }
   0x9   : > { %p1130_p6 = scmp.eq.s32.totalorder %s1487_s12, 0  ;;  %s280_s21 = sshll.u32 %s1615_s5, 4  ;;  %s281_s21 = int_to_ptr.hbm [resolvable:$true] %s280_s21 }
   0xa   : > { %p1504_p7 = pnand %p950_p3, %p246_p5  ;;  %s263_s24 = sshll.u32 %s1613_s3, 4  ;;  %s264_s24 = int_to_ptr.hbm [resolvable:$true] %s263_s24 }
   0xb   : > { %s1419_s26 = smov [#allocation4]   ;;  %s1420_s28 = smov 64  }
   0xc   : > { %p1120_p8 = pneg %p1504_p7  ;;  %s282_s27 = sshll.u32 %s1419_s26, 4  ;;  %s283_s27 = int_to_ptr.vmem [resolvable:$true] %s282_s27 }
   0xd   : > { %s1421_s29 = smov 4   ;;  %s1422_s11 = smov [#allocation2]  }
   0xe   : > { %p1518_p9 = pnand %p1130_p6, %p1120_p8  ;;  %s265_s14 = sshll.u32 %s1422_s11, 4  ;;  %s266_s14 = int_to_ptr.vmem [resolvable:$true] %s265_s14 }
   0xf   : > { %s297_s20 = sshll.u32 %s1617_s7, 4  ;;  %s1423_s22 = smov [#allocation6]   ;;  %s298_s20 = int_to_ptr.hbm [resolvable:$true] %s297_s20 }
  0x10   : > { %1126 = dma.hbm_to_vmem [thread:$0]  (!%p1518_p9), %s281_s21, 1024, %s283_s27, [#allocation5], %s1420_s28, %s1420_s28, %s1421_s29  }
  0x11   : > { %1123 = dma.hbm_to_vmem [thread:$0]  (!%p1518_p9), %s264_s24, 1024, %s266_s14, [#allocation3], %s1420_s28, %s1420_s28, %s1421_s29  }
  0x12   : > { %s299_s23 = sshll.u32 %s1423_s22, 4  ;;  %335 = sbr.rel (%p1504_p7) target bundleno = 644 (0x284), region = 56  ;;  %s300_s23 = int_to_ptr.vmem [resolvable:$true] %s299_s23 }
  0x13   : > { %1129 = dma.hbm_to_vmem [thread:$0]  (!%p1518_p9), %s298_s20, 1024, %s300_s23, [#allocation5], %s1420_s28, %s1420_s28, %s1421_s29  }
  0x17   : > { %1368 = dma.done.wait (%p1130_p6), [#allocation3], 1024  }
  0x18   : > { %1370 = vsyncadd (%p1130_p6), [#allocation3], 4294966272 }
  0x19   : > { %1372 = dma.done.wait (%p1130_p6), [#allocation5], 2048  }
  0x1a   : > { %1374 = vsyncadd (%p1130_p6), [#allocation5], 4294965248  ;;  %s1542_s21 = sshll.u32 %s1487_s12, 1  ;;  %v1080_v0 = vld [vmem:[%s1611_s1] sm:$0xff]  ;;  %v1088_v4 = vld [vmem:[#allocation2 + $0x38] sm:$0xff]  ;;  %vm420_vm0 = vcmask 130048  }
  0x1b   : > { %p390_p10 = scmp.lt.s32.totalorder %s1542_s21, 2  ;;  %431 = vmatpush.bf16.msra.mxu0 %v1080_v0  ;;  %v1087_v5 = vld [vmem:[#allocation2 + $0x30] sm:$0xff]  ;;  %509 = vmatpush.bf16.msra.mxu1 %v1088_v4  ;;  %v1086_v6 = vld [vmem:[#allocation2 + $0x28] sm:$0xff]  ;;  %v1085_v7 = vld [vmem:[#allocation2 + $0x20] sm:$0xff]  ;;  %s382_s23 = sand.u32 1, %s1377_s30   ;;  %vm695_vm1 = vcmask 31744  }
  0x1c   : > { %v1084_v8 = vld [vmem:[#allocation2 + $0x18] sm:$0xff]  ;;  %v1083_v9 = vld [vmem:[#allocation2 + $0x10] sm:$0xff]  ;;  %v1082_v10 = vld [vmem:[#allocation2 + $0x8] sm:$0xff]  ;;  %s706_s30 = ssub.s32 (%p1499_p4), 3, %s1542_s21 }
  0x1d   : > { %s391_s18 = scalar_select %p390_p10, %s1542_s21, 2  ;;  %v1081_v11 = vld [vmem:[#allocation2] sm:$0xff]  ;;  %v1096_v12 = vld [vmem:[#allocation4 + $0x38] sm:$0xff]  ;;  %v1095_v13 = vld [vmem:[#allocation4 + $0x30] sm:$0xff] }
  0x1e   : > { %594 = vmatpush.bf16.msra.mxu2 %v1096_v12  ;;  %v1094_v14 = vld [vmem:[#allocation4 + $0x28] sm:$0xff]  ;;  %v1093_v15 = vld [vmem:[#allocation4 + $0x20] sm:$0xff]  ;;  %v1092_v24 = vld [vmem:[#allocation4 + $0x18] sm:$0xff]  ;;  %p707_p11 = scmp.lt.s32.totalorder (%p1499_p4), %s706_s30, 2 }
  0x1f   : > { %s961_s24 = sshll.u32 %s391_s18, 3  ;;  %510 = vmatpush.bf16.msra.mxu1 %v1087_v5  ;;  %v1229_v17 = vld [vmem:[%s1612_s2] ss:$0 sm:$0xff]  ;;  %v1091_v25 = vld [vmem:[#allocation4 + $0x10] sm:$0xff]  ;;  %v1090_v26 = vld [vmem:[#allocation4 + $0x8] sm:$0xff]  ;;  %s959_s18 = sshll.u32 %s382_s23, 4 }
  0x20   : > { %s393_s27 = scalar_lea.vmem %s1610_s0, %s961_s24  ;;  %v1089_v27 = vld [vmem:[#allocation4] sm:$0xff]  ;;  %v1104_v28 = vld [vmem:[#allocation6 + $0x38] sm:$0xff]  ;;  %v1103_v29 = vld [vmem:[#allocation6 + $0x30] sm:$0xff]  ;;  %s1565_s26 = scalar_lea.vmem [#allocation7], %s959_s18  }
  0x21   : > { %v405_v1 = vld [vmem:[%s393_s27] sm:$0xff]  ;;  %v406_v2 = vld [vmem:[%s393_s27 + $0x8] sm:$0xff]  ;;  %675 = vmatpush.bf16.msra.mxu3 %v1104_v28  ;;  %v1100_v40 = vld [vmem:[#allocation6 + $0x18] sm:$0xff]  ;;  %s1105_s27 = sshll.u32 (%p1499_p4), %s1487_s12, 4 }
  0x22   : > { %v407_v3 = vpack.c.bf16 %v406_v2, %v405_v1  ;;  %595 = vmatpush.bf16.msra.mxu2 %v1095_v13  ;;  %v1102_v30 = vld [vmem:[#allocation6 + $0x28] sm:$0xff]  ;;  %v1101_v31 = vld [vmem:[#allocation6 + $0x20] sm:$0xff]  ;;  %v1099_v41 = vld [vmem:[#allocation6 + $0x10] sm:$0xff]  ;;  %s1576_s11 = scalar_lea.vmem (%p1499_p4), %s1619_s9, %s1105_s27  }
  0x23   : > { %511 = vmatpush.bf16.msra.mxu1 %v1086_v6  ;;  %v1230_v33 = vld [vmem:[%s1614_s4] ss:$0 sm:$0xff]  ;;  %v1098_v42 = vld [vmem:[#allocation6 + $0x8] sm:$0xff] }
  0x24   : > { %966 = vmatmul.msk.bf16.vlgmr.msra.gmra.mxu0 %vm420_vm0, %v407_v3  ;;  %v1097_v43 = vld [vmem:[#allocation6] sm:$0xff] }
  0x25   : > { %676 = vmatpush.bf16.msra.mxu3 %v1103_v29  ;;  %v1231_v45 = vld [vmem:[%s1616_s6] ss:$0 sm:$0xff] }
  0x26   : > { %596 = vmatpush.bf16.msra.mxu2 %v1094_v14  ;;  %v1232_v52 = vld [vmem:[%s1618_s8] ss:$0 sm:$0xff] }
  0x27   : > { %512 = vmatpush.bf16.msra.mxu1 %v1085_v7 }
  0x29   : > { %677 = vmatpush.bf16.msra.mxu3 %v1102_v30 }
  0x2a   : > { %597 = vmatpush.bf16.msra.mxu2 %v1093_v15 }
  0x2b   : > { %513 = vmatpush.bf16.msra.mxu1 %v1084_v8 }
  0x2d   : > { %678 = vmatpush.bf16.msra.mxu3 %v1101_v31 }
  0x2e   : > { %598 = vmatpush.bf16.msra.mxu2 %v1092_v24 }
  0x2f   : > { %514 = vmatpush.bf16.msra.mxu1 %v1083_v9 }
  0x31   : > { %679 = vmatpush.bf16.msra.mxu3 %v1100_v40 }
  0x32   : > { %599 = vmatpush.bf16.msra.mxu2 %v1091_v25 }
  0x33   : > { %515 = vmatpush.bf16.msra.mxu1 %v1082_v10 }
  0x35   : > { %680 = vmatpush.bf16.msra.mxu3 %v1099_v41 }
  0x36   : > { %600 = vmatpush.bf16.msra.mxu2 %v1090_v26 }
  0x37   : > { %516 = vmatpush.bf16.msra.mxu1 %v1081_v11 }
  0x39   : > { %681 = vmatpush.bf16.msra.mxu3 %v1098_v42 }
  0x3a   : > { %601 = vmatpush.bf16.msra.mxu2 %v1089_v27 }
  0x3d   : > { %682 = vmatpush.bf16.msra.mxu3 %v1097_v43 }
  0xa1   : > { %v433_v16 = vpop.f32.mrf.mxu0 }
  0xa2   : > { %v434_v18 = vadd.f32 %v1229_v17, %v433_v16 }
  0xa4   : > { %v438_v21 = vmax.f32 %v434_v18, 0.0 }
  0xa9   : > { %v435_v19 = vpop.f32.mrf.mxu0 }
  0xaa   : > { %v436_v20 = vadd.f32 %v1229_v17, %v435_v19 }
  0xac   : > { %v439_v22 = vmax.f32 %v436_v20, 0.0 }
  0xae   : > { %v440_v23 = vpack.c.bf16 %v439_v22, %v438_v21 }
  0xb0   : > { %517 = vmatmul.bf16.vlgmr.msra.gmra.mxu1 %v440_v23 }
 0x12d   : > { %v518_v32 = vpop.f32.mrf.mxu1 }
 0x12e   : > { %v519_v34 = vadd.f32 %v1230_v33, %v518_v32 }
 0x130   : > { %v523_v37 = vmax.f32 %v519_v34, 0.0 }
 0x135   : > { %v520_v35 = vpop.f32.mrf.mxu1 }
 0x136   : > { %v521_v36 = vadd.f32 %v1230_v33, %v520_v35 }
 0x138   : > { %v524_v38 = vmax.f32 %v521_v36, 0.0 }
 0x13a   : > { %v525_v39 = vpack.c.bf16 %v524_v38, %v523_v37 }
 0x13c   : > { %602 = vmatmul.bf16.vlgmr.msra.gmra.mxu2 %v525_v39 }
 0x1bf   : > { %v603_v44 = vpop.f32.mrf.mxu2 }
 0x1c0   : > { %v604_v46 = vadd.f32 %v1231_v45, %v603_v44 }
 0x1c2   : > { %v608_v49 = vmax.f32 %v604_v46, 0.0 }
 0x1c7   : > { %v605_v47 = vpop.f32.mrf.mxu2 }
 0x1c8   : > { %v606_v48 = vadd.f32 %v1231_v45, %v605_v47 }
 0x1ca   : > { %v609_v50 = vmax.f32 %v606_v48, 0.0 }
 0x1cc   : > { %v610_v51 = vpack.c.bf16 %v609_v50, %v608_v49 }
 0x1ce   : > { %683 = vmatmul.bf16.vlgmr.msra.gmra.mxu3 %v610_v51 }
 0x251   : > { %v684_v53 = vpop.f32.mrf.mxu3 }
 0x252   : > { %v693_v54 = vadd.f32 %v1232_v52, %v684_v53 }
 0x254   : > { %696 = vst.msk [vmem:[%s1565_s26] sm:$0xff] %vm695_vm1, %v693_v54 }
 0x258   : > { %704 = sbr.rel (!%p1499_p4) target bundleno = 644 (0x284), region = 72 }
 0x259   : > { %v686_v55 = vpop.f32.mrf.mxu3 }
 0x25a   : > { %v694_v56 = vadd.f32 %v1232_v52, %v686_v55 }
 0x25c   : > { %697 = vst.msk [vmem:[%s1565_s26 + $0x8] sm:$0xff] %vm695_vm1, %v694_v56 }
 0x25d   : > { %s1627_s30 = smov (!%p707_p11, %s706_s30), 2 }
 0x25e   : > { %s1065_s14 = sshll.u32 %s1627_s30, 3 }
 0x25f   : > { %p1068_p12 = scmp.eq.s32.totalorder %s1065_s14, 0 }
 0x260   : > { %s1582_s15 = sshrl.u32 (!%p1068_p12), %s1627_s30, 1 }
 0x261   : > { %715 = sbr.rel (%p1068_p12) target bundleno = 644 (0x284), region = 76  ;;  %p1069_p13 = scmp.le.s32.totalorder (!%p1068_p12), %s1582_s15, 0 }
 0x266   : > { %878 = sbr.rel (%p1069_p13) target bundleno = 627 (0x273), region = 153  ;;  %s1387_s12 = smov (!%p1069_p13), %s1576_s11  }
 0x267   : > { %s1391_s17 = smov (!%p1069_p13), %s1565_s26   ;;  %s1395_s21 = smov (!%p1069_p13), 0  }
 0x268   : > { %s1399_s19 = smov (!%p1069_p13), 0  }
 0x26b LB: >> { %v780_v57 = vld [vmem:[%s1393_s17] sm:$0xff]  ;;  %v782_v58 = vld [vmem:[%s1393_s17 + $0x8] sm:$0xff]  ;;  %s784_s20 = sadd.s32 1, %s1397_s21  ;;  %s774_s19 = sadd.s32 1, %s1401_s19   ;;  %s1401_s19 = sphi %s1399_s19, %s774_s19   ;;  %s1397_s21 = sphi %s1395_s21, %s1396_s21   ;;  %s1393_s17 = sphi %s1391_s17, %s789_s17   ;;  %s1389_s12 = sphi %s1387_s12, %s790_s12  }
 0x26c   : >> { %781 = vst [vmem:[%s1389_s12] sm:$0xff] %v780_v57  ;;  %p785_p0 = scmp.ge.s32.totalorder %s784_s20, %s1582_s15  ;;  %p773_p1 = scmp.ge.s32.totalorder %s774_s19, %s1582_s15 }
 0x26d   : >> { %783 = vst [vmem:[%s1389_s12 + $0x8] sm:$0xff] %v782_v58 }
 0x26e   : >> { %s1629_s20 = smov (%p785_p0, %s784_s20), 0  ;;  %776 = sbr.rel (!%p773_p1) target bundleno = 619 (0x26b), region = 159 }
 0x26f   : >> { %s1070_s22 = sshll.u32 %s1629_s20, 4  ;;  %s1396_s21 = smov %s1629_s20  }
 0x270   : >> { %s789_s17 = scalar_lea.vmem %s1565_s26, %s1070_s22 [#allocation7]   ;;  %s790_s12 = scalar_lea.vmem %s1576_s11, %s1070_s22  }
 0x273 PF: > { %s1592_s23 = sand.u32 1, %s1627_s30   ;;  %s1106_s18 = sshll.u32 %s1582_s15, 4 }
 0x274   : > { %s795_s24 = scalar_lea.vmem %s1565_s26, %s1106_s18 [#allocation7]   ;;  %s797_s25 = scalar_lea.vmem %s1576_s11, %s1106_s18  }
 0x275   : > { %p1075_p2 = scmp.le.s32.totalorder %s1592_s23, 0 }
 0x276   : > { %s1403_s27 = smov (!%p1075_p2), %s797_s25   ;;  %s1407_s28 = smov (!%p1075_p2), %s795_s24  }
 0x277   : > { %892 = sbr.rel (%p1075_p2) target bundleno = 644 (0x284), region = 164  ;;  %s1411_s29 = smov (!%p1075_p2), 0  }
 0x278   : > { %s1415_s14 = smov (!%p1075_p2), 0  }
 0x27c LB: >> { %v807_v59 = vld [vmem:[%s1409_s28] sm:$0xff]  ;;  %s809_s30 = sadd.s32 1, %s1413_s29  ;;  %s801_s14 = sadd.s32 1, %s1417_s14   ;;  %s1417_s14 = sphi %s1415_s14, %s801_s14   ;;  %s1413_s29 = sphi %s1411_s29, %s1412_s29   ;;  %s1409_s28 = sphi %s1407_s28, %s814_s28   ;;  %s1405_s27 = sphi %s1403_s27, %s815_s27  }
 0x27d   : >> { %808 = vst [vmem:[%s1405_s27] sm:$0xff] %v807_v59  ;;  %p810_p3 = scmp.ge.s32.totalorder %s809_s30, %s1592_s23  ;;  %p800_p4 = scmp.ge.s32.totalorder %s801_s14, %s1592_s23 }
 0x27f   : >> { %s1631_s30 = smov (%p810_p3, %s809_s30), 0  ;;  %803 = sbr.rel (!%p800_p4) target bundleno = 636 (0x27c), region = 170 }
 0x280   : >> { %s1076_s26 = sshll.u32 %s1631_s30, 3  ;;  %s1412_s29 = smov %s1631_s30  }
 0x281   : >> { %s814_s28 = scalar_lea.vmem %s795_s24, %s1076_s26 [#allocation7]   ;;  %s815_s27 = scalar_lea.vmem %s797_s25, %s1076_s26  }
 0x284 PF: > { %p18_p5 = scmp.ge.s32.totalorder %s1489_s13, 4   ;;  %s1623_s30 = smov %s1381_s10 }
 0x285   : > { %s1624_s10 = smov %s1497_s16  ;;  %s1625_s11 = smov %s1489_s13 }
 0x286   :  { %20 = sbr.rel (!%p18_p5) target bundleno = 3 (0x3), region = 181 }
 0x28b   :  { %831 = vsyncpa [#allocation3], 1 }
 0x28c   :  { %833 = vsyncpa [#allocation3 + $0x1], 1 }
 0x28d   :  { %834 = vsyncpa [#allocation5], 1 }

</bundles_post_ra>
